<compile_context>
chip_gen: v7x
topology: tpu7x:2x2x1
jax: 0.10.0
libtpu: 0.0.40
codegen_flags: <defaults>
</compile_context>

<pallas_src>
import numpy as np
import jax
import jax.numpy as jnp
from jax.experimental import pallas as pl
from jax.experimental.pallas import tpu as pltpu


def _box_matrix(length: int, kernel_size: int) -> np.ndarray:
    """1-D box filter (width K, weight 1/K) with replicate padding, as a dense matrix."""
    p = kernel_size // 2
    idx = np.arange(length)
    m = np.zeros((length, length), dtype=np.float32)
    for d in range(-p, p + 1):
        src = np.clip(idx + d, 0, length - 1)
        np.add.at(m, (idx, src), 1.0)
    return m / float(kernel_size)


def _lcs_body(x, chan_mean, kh, kwt, o_ref):
    """Core math on the (H, L) lane-dense block; chan_mean is (1, L) or None."""
    h = x.shape[0]
    xc = x - chan_mean if chan_mean is not None else x                      # (H, L)

    # Fused box filter of xc and xc^2: stack along rows -> one pair of batched matmuls.
    xb = jnp.concatenate([xc, xc * xc], axis=0)                             # (2H, L)
    t = jnp.dot(kh, xb, preferred_element_type=jnp.float32)                 # (2H, L)
    r = jnp.dot(t, kwt, preferred_element_type=jnp.float32)                 # (2H, L)
    mu = r[:h]                                                              # (H, L)
    ex2 = r[h:]                                                             # (H, L)

    var = jnp.maximum(ex2 - mu * mu, 0.0)        # clamp: FP rounding can go slightly < 0
    denom = jnp.sqrt(var) + 1e-8
    inv = pl.reciprocal(denom, approx=True)      # EUP slot
    inv = inv * (2.0 - denom * inv)              # one Newton step -> ~f32-exact 1/denom

    # Single full-tile, lane-dense store of the whole block.
    o_ref[...] = (xc - mu) * inv


def _lcs_kernel_mean(x_ref, mc_ref, kh_ref, kwt_ref, o_ref):
    # x_ref:   (H, L) with L = C*N*W, lane j <-> (c, n, w), c = j // (N*W)
    # mc_ref:  (L, L)   per-channel averaging matrix (entries 1/(N*H*W) within a channel)
    # kh_ref:  (2H, 2H) kron(I_2, M_H)       -- height box filter for [xc ; xc^2]
    # kwt_ref: (L, L)   kron(I_{C*N}, M_W^T) -- width box filter per packed image
    x = x_ref[...]
    col_sum = jnp.sum(x, axis=0, keepdims=True)                             # (1, L)
    chan_mean = jnp.dot(col_sum, mc_ref[...],
                        preferred_element_type=jnp.float32)                 # (1, L)
    _lcs_body(x, chan_mean, kh_ref[...], kwt_ref[...], o_ref)


def _lcs_kernel_shift(x_ref, kh_ref, kwt_ref, o_ref):
    # shift_val path: the constant shift is applied on the host; no mean matrix.
    _lcs_body(x_ref[...], None, kh_ref[...], kwt_ref[...], o_ref)


def local_context_standardization(x: jax.Array, kernel_size: int = 9,
                                  shift_val=None) -> jax.Array:
    """x: (N, C, H, W) float32. Returns (N, C, H, W) float32."""
    assert kernel_size % 2 == 1, "only odd kernel_size matches the replicate-'same' window"
    x = x.astype(jnp.float32)
    n, c, h, w = x.shape
    l = c * n * w

    mh = _box_matrix(h, kernel_size)                      # (H, H)
    mw = _box_matrix(w, kernel_size)                      # (W, W)
    kh2 = np.kron(np.eye(2, dtype=np.float32), mh)        # (2H, 2H)
    kwt = np.kron(np.eye(c * n, dtype=np.float32), mw.T)  # (L, L)

    # Lane-dense repack: (N, C, H, W) -> (H, C, N, W) -> (H, C*N*W).
    # Layout plumbing only; keeps the kernel's output store full-width / unmasked.
    xp = jnp.transpose(x, (2, 1, 0, 3)).reshape(h, l)

    full = lambda i: (0, 0)
    spec_x = pl.BlockSpec((h, l), full)
    spec_kh = pl.BlockSpec((2 * h, 2 * h), full)
    spec_kwt = pl.BlockSpec((l, l), full)
    cparams = pltpu.CompilerParams(dimension_semantics=("arbitrary",))

    if shift_val is None:
        mc = np.kron(np.eye(c, dtype=np.float32),
                     np.ones((n * w, n * w), dtype=np.float32)) / float(n * h * w)
        out_packed = pl.pallas_call(
            _lcs_kernel_mean,
            out_shape=jax.ShapeDtypeStruct((h, l), jnp.float32),
            grid_spec=pltpu.PrefetchScalarGridSpec(
                num_scalar_prefetch=0,
                grid=(1,),  # whole problem in one block (tiny shapes)
                in_specs=[spec_x, pl.BlockSpec((l, l), full), spec_kh, spec_kwt],
                out_specs=spec_x,
            ),
            compiler_params=cparams,
        )(xp, jnp.asarray(mc), jnp.asarray(kh2), jnp.asarray(kwt))
    else:
        xp = xp - jnp.float32(shift_val)
        out_packed = pl.pallas_call(
            _lcs_kernel_shift,
            out_shape=jax.ShapeDtypeStruct((h, l), jnp.float32),
            grid_spec=pltpu.PrefetchScalarGridSpec(
                num_scalar_prefetch=0,
                grid=(1,),
                in_specs=[spec_x, spec_kh, spec_kwt],
                out_specs=spec_x,
            ),
            compiler_params=cparams,
        )(xp, jnp.asarray(kh2), jnp.asarray(kwt))

    # Unpack back to NCHW.
    return out_packed.reshape(h, c, n, w).transpose(2, 1, 0, 3)


def _reference(x: jnp.ndarray, kernel_size: int = 9, shift_val=None) -> jnp.ndarray:
    """Pure-JAX reference: direct box conv with explicit replicate padding."""
    k = kernel_size
    p = k // 2
    _, _, h, w = x.shape
    if shift_val is None:
        xc = x - x.mean(axis=(0, 2, 3), keepdims=True)
    else:
        xc = x - shift_val
    xp = jnp.pad(xc, ((0, 0), (0, 0), (p, p), (p, p)), mode="edge")
    xp2 = xp * xp
    mu = jnp.zeros_like(xc)
    ex2 = jnp.zeros_like(xc)
    for a in range(k):
        for b in range(k):
            mu = mu + xp[:, :, a:a + h, b:b + w]
            ex2 = ex2 + xp2[:, :, a:a + h, b:b + w]
    mu = mu / (k * k)
    ex2 = ex2 / (k * k)
    var = ex2 - mu * mu
    return (xc - mu) / (jnp.sqrt(var) + 1e-8)


if __name__ == "__main__":
    key = jax.random.PRNGKey(0)
    N, C, H, W = 2, 4, 16, 16
    K = 9
    x = jax.random.normal(key, (N, C, H, W), dtype=jnp.float32)

    out = jax.block_until_ready(local_context_standardization(x, kernel_size=K))
    ref = jax.block_until_ready(_reference(x, kernel_size=K))

    assert out.shape == (N, C, H, W) and out.dtype == jnp.float32
    err = float(np.max(np.abs(np.asarray(out) - np.asarray(ref))))
    assert np.allclose(np.asarray(out), np.asarray(ref), rtol=1e-3, atol=1e-3), (
        "mismatch vs reference: max abs err = %g" % err)

    print("KERNEL_OK")
</pallas_src>

<mosaic_0001>
module attributes {stable_mosaic.version = 11 : i64} {
  func.func @_lcs_kernel_mean(%arg0: i32, %arg1: memref<16x128xf32, #tpu.memory_space<vmem>>, %arg2: memref<128x128xf32, #tpu.memory_space<vmem>>, %arg3: memref<32x32xf32, #tpu.memory_space<vmem>>, %arg4: memref<128x128xf32, #tpu.memory_space<vmem>>, %arg5: memref<16x128xf32, #tpu.memory_space<vmem>>) attributes {dimension_semantics = [#tpu.dimension_semantics<arbitrary>], iteration_bounds = array<i64: 1>, scalar_prefetch = 0 : i64, scratch_operands = 0 : i64, tpu.core_type = #tpu.core_type<tc>, window_params = [{pipeline_mode = #tpu.pipeline_mode<synchronous>, transform_indices = @transform_0, window_bounds = array<i64: 16, 128>}, {pipeline_mode = #tpu.pipeline_mode<synchronous>, transform_indices = @transform_1, window_bounds = array<i64: 128, 128>}, {pipeline_mode = #tpu.pipeline_mode<synchronous>, transform_indices = @transform_2, window_bounds = array<i64: 32, 32>}, {pipeline_mode = #tpu.pipeline_mode<synchronous>, transform_indices = @transform_3, window_bounds = array<i64: 128, 128>}, {pipeline_mode = #tpu.pipeline_mode<synchronous>, transform_indices = @transform_4, window_bounds = array<i64: 16, 128>}]} {
    %c0 = arith.constant 0 : index
    %c0_0 = arith.constant 0 : index
    %0 = vector.load %arg1[%c0, %c0_0] : memref<16x128xf32, #tpu.memory_space<vmem>>, vector<16x128xf32>
    %cst = arith.constant dense<0.000000e+00> : vector<128xf32>
    %1 = vector.multi_reduction <add>, %0, %cst [0] : vector<16x128xf32> to vector<128xf32>
    %2 = vector.shape_cast %1 : vector<128xf32> to vector<1x128xf32>
    %c0_1 = arith.constant 0 : index
    %c0_2 = arith.constant 0 : index
    %3 = vector.load %arg2[%c0_1, %c0_2] : memref<128x128xf32, #tpu.memory_space<vmem>>, vector<128x128xf32>
    %cst_3 = arith.constant dense<0.000000e+00> : vector<1x128xf32>
    %4 = tpu.matmul %2, %3, %cst_3 {dimension_numbers = #tpu.dot_dimension_numbers<[1], [0], [0], [1], [0, 0, 1, 1], [], []>} : vector<1x128xf32>, vector<128x128xf32>, vector<1x128xf32> -> vector<1x128xf32>
    %c0_4 = arith.constant 0 : index
    %c0_5 = arith.constant 0 : index
    %5 = vector.load %arg3[%c0_4, %c0_5] : memref<32x32xf32, #tpu.memory_space<vmem>>, vector<32x32xf32>
    %c0_6 = arith.constant 0 : index
    %c0_7 = arith.constant 0 : index
    %6 = vector.load %arg4[%c0_6, %c0_7] : memref<128x128xf32, #tpu.memory_space<vmem>>, vector<128x128xf32>
    %7 = vector.broadcast %4 : vector<1x128xf32> to vector<16x128xf32>
    %8 = arith.subf %0, %7 : vector<16x128xf32>
    %9 = arith.mulf %8, %8 : vector<16x128xf32>
    %10 = tpu.concatenate %8, %9 in 0 : vector<16x128xf32>, vector<16x128xf32> -> vector<32x128xf32>
    %cst_8 = arith.constant dense<0.000000e+00> : vector<32x128xf32>
    %11 = tpu.matmul %5, %10, %cst_8 {dimension_numbers = #tpu.dot_dimension_numbers<[1], [0], [0], [1], [0, 0, 1, 1], [], []>} : vector<32x32xf32>, vector<32x128xf32>, vector<32x128xf32> -> vector<32x128xf32>
    %cst_9 = arith.constant dense<0.000000e+00> : vector<32x128xf32>
    %12 = tpu.matmul %11, %6, %cst_9 {dimension_numbers = #tpu.dot_dimension_numbers<[1], [0], [0], [1], [0, 0, 1, 1], [], []>} : vector<32x128xf32>, vector<128x128xf32>, vector<32x128xf32> -> vector<32x128xf32>
    %13 = vector.extract_strided_slice %12 {offsets = [0, 0], sizes = [16, 128], strides = [1, 1]} : vector<32x128xf32> to vector<16x128xf32>
    %14 = vector.extract_strided_slice %12 {offsets = [16, 0], sizes = [16, 128], strides = [1, 1]} : vector<32x128xf32> to vector<16x128xf32>
    %15 = arith.mulf %13, %13 : vector<16x128xf32>
    %16 = arith.subf %14, %15 : vector<16x128xf32>
    %cst_10 = arith.constant 0.000000e+00 : f32
    %17 = vector.broadcast %cst_10 : f32 to vector<16x128xf32>
    %18 = arith.maximumf %16, %17 : vector<16x128xf32>
    %19 = math.sqrt %18 : vector<16x128xf32>
    %cst_11 = arith.constant 9.99999993E-9 : f32
    %20 = vector.broadcast %cst_11 : f32 to vector<16x128xf32>
    %21 = arith.addf %19, %20 : vector<16x128xf32>
    %22 = tpu.reciprocal %21 {approx = true} : vector<16x128xf32> -> vector<16x128xf32>
    %23 = arith.mulf %21, %22 : vector<16x128xf32>
    %cst_12 = arith.constant 2.000000e+00 : f32
    %24 = vector.broadcast %cst_12 : f32 to vector<16x128xf32>
    %25 = arith.subf %24, %23 : vector<16x128xf32>
    %26 = arith.mulf %22, %25 : vector<16x128xf32>
    %27 = arith.subf %8, %13 : vector<16x128xf32>
    %28 = arith.mulf %27, %26 : vector<16x128xf32>
    %c0_13 = arith.constant 0 : index
    %c0_14 = arith.constant 0 : index
    %29 = vector.load %arg5[%c0_13, %c0_14] : memref<16x128xf32, #tpu.memory_space<vmem>>, vector<16x128xf32>
    tpu.vector_store %arg5[%c0_13, %c0_14], %28 {strides = array<i32>} : memref<16x128xf32, #tpu.memory_space<vmem>>, vector<16x128xf32>,
    return
  }
  func.func @transform_0(%arg0: i32) -> (i32, i32) {
    %c0_i32 = arith.constant 0 : i32
    %c0_i32_0 = arith.constant 0 : i32
    %c0_i32_1 = arith.constant 0 : i32
    return %c0_i32, %c0_i32_0 : i32, i32
  }
  func.func @transform_1(%arg0: i32) -> (i32, i32) {
    %c0_i32 = arith.constant 0 : i32
    %c0_i32_0 = arith.constant 0 : i32
    %c0_i32_1 = arith.constant 0 : i32
    return %c0_i32, %c0_i32_0 : i32, i32
  }
  func.func @transform_2(%arg0: i32) -> (i32, i32) {
    %c0_i32 = arith.constant 0 : i32
    %c0_i32_0 = arith.constant 0 : i32
    %c0_i32_1 = arith.constant 0 : i32
    return %c0_i32, %c0_i32_0 : i32, i32
  }
  func.func @transform_3(%arg0: i32) -> (i32, i32) {
    %c0_i32 = arith.constant 0 : i32
    %c0_i32_0 = arith.constant 0 : i32
    %c0_i32_1 = arith.constant 0 : i32
    return %c0_i32, %c0_i32_0 : i32, i32
  }
  func.func @transform_4(%arg0: i32) -> (i32, i32) {
    %c0_i32 = arith.constant 0 : i32
    %c0_i32_0 = arith.constant 0 : i32
    %c0_i32_1 = arith.constant 0 : i32
    return %c0_i32, %c0_i32_0 : i32, i32
  }
}

</mosaic_0001>

<bundles_post_ra>
// kernel: tpu_custom_call.1
= control target key start
LH: loop header
LB: loop body
LE: loop exit
PB: predicated region body
PF: predicated region fallthrough
CT: control target
= control target key end

     0   :  { %9 = vsyncpa [#allocation3], 0  ;;  %s910_s0 = inlined_call_operand.hbm [shape: f32[16,128], index: 0, kind: input, shape index: {}]   ;;  %s911_s1 = inlined_call_operand.hbm [shape: f32[128,128], index: 1, kind: input, shape index: {}]   ;;  %s912_s2 = inlined_call_operand.hbm [shape: f32[32,32], index: 2, kind: input, shape index: {}]   ;;  %s913_s3 = inlined_call_operand.hbm [shape: f32[128,128], index: 3, kind: input, shape index: {}]   ;;  %s914_s4 = inlined_call_operand.hbm [shape: f32[16,128], index: 4, kind: output, shape index: {}]  }
   0x1   :  { %10 = vsyncpa [#allocation6], 0 }
   0x2   :  { %11 = vsyncpa [#allocation9], 0 }
   0x3   :  { %12 = vsyncpa [#allocation4], 0  ;;  %s770_s15 = smov [#allocation5]   ;;  %s771_s17 = smov [#allocation2]  }
   0x4   :  { %s30_s16 = sshll.u32 %s770_s15, 4  ;;  %s18_s18 = sshll.u32 %s771_s17, 4  ;;  %s31_s16 = int_to_ptr.vmem [resolvable:$true] %s30_s16  ;;  %s805_s18 = int_to_ptr.vmem [resolvable:$true] %s18_s18 }
   0x5   :  { %s652_s21 = scalar_lea.hbm %s911_s1, 2048 }
   0x6   :  { %p653_p0 = scmp.ne.s32.totalorder %s911_s1, %s652_s21  ;;  %p656_p1 = scmp.lt.u32.totalorder %s652_s21, %s911_s1 }
   0x8   :  { %p658_p2 = pnand %p656_p1, %p653_p0 }
   0xa   :  { %661 = shalt.err (!%p658_p2)
}
   0xb   :  { %s662_s26 = scalar_lea.vmem %s31_s16, 2048  ;;  %p667_p4 = scmp.lt.s32.totalorder %s31_s16, %s31_s16 }
   0xc   :  { %p663_p3 = scmp.ne.s32.totalorder %s31_s16, %s662_s26  ;;  %p668_p5 = scmp.lt.s32.totalorder %s662_s26, %s662_s26 }
   0xe   :  { %p669_p6 = por %p668_p5, %p667_p4 }
  0x10   :  { %p670_p7 = pnand %p669_p6, %p663_p3 }
  0x12   :  { %673 = shalt.err (!%p670_p7)
}
  0x13   :  { %s772_s27 = smov 128   ;;  %s773_s28 = smov 8  }
  0x14   :  { %36 = dma.hbm_to_vmem [thread:$0]  %s911_s1, 2048, %s31_s16, [#allocation6], %s772_s27, %s772_s27, %s773_s28  }
  0x15   :  { %s674_s7 = scalar_lea.hbm %s910_s0, 256 }
  0x16   :  { %p675_p8 = scmp.ne.s32.totalorder %s910_s0, %s674_s7  ;;  %p678_p9 = scmp.lt.u32.totalorder %s674_s7, %s910_s0 }
  0x18   :  { %p680_p10 = pnand %p678_p9, %p675_p8 }
  0x1a   :  { %683 = shalt.err (!%p680_p10)
}
  0x1b   :  { %s684_s12 = scalar_lea.vmem %s805_s18, 256  ;;  %p689_p12 = scmp.lt.s32.totalorder %s805_s18, %s805_s18 }
  0x1c   :  { %p685_p11 = scmp.ne.s32.totalorder %s805_s18, %s684_s12  ;;  %p690_p13 = scmp.lt.s32.totalorder %s684_s12, %s684_s12 }
  0x1e   :  { %p691_p0 = por %p690_p13, %p689_p12 }
  0x20   :  { %p692_p1 = pnand %p691_p0, %p685_p11 }
  0x22   :  { %695 = shalt.err (!%p692_p1)
}
  0x23   :  { %24 = dma.hbm_to_vmem [thread:$0]  %s910_s0, 256, %s805_s18, [#allocation3], %s772_s27, %s772_s27, %s773_s28  }
  0x24   :  { %s774_s14 = smov [#allocation7]   ;;  %s775_s16 = smov [#allocation8]  }
  0x25   :  { %s42_s15 = sshll.u32 %s774_s14, 4  ;;  %s54_s17 = sshll.u32 %s775_s16, 4  ;;  %s43_s15 = int_to_ptr.vmem [resolvable:$true] %s42_s15  ;;  %s842_s17 = int_to_ptr.vmem [resolvable:$true] %s54_s17 }
  0x26   :  { %s696_s21 = scalar_lea.hbm %s912_s2, 512 }
  0x27   :  { %p697_p2 = scmp.ne.s32.totalorder %s912_s2, %s696_s21  ;;  %p700_p3 = scmp.lt.u32.totalorder %s696_s21, %s912_s2 }
  0x29   :  { %p702_p4 = pnand %p700_p3, %p697_p2 }
  0x2b   :  { %705 = shalt.err (!%p702_p4)
}
  0x2c   :  { %s706_s0 = scalar_lea.vmem %s43_s15, 512  ;;  %p711_p6 = scmp.lt.s32.totalorder %s43_s15, %s43_s15 }
  0x2d   :  { %p707_p5 = scmp.ne.s32.totalorder %s43_s15, %s706_s0  ;;  %p712_p7 = scmp.lt.s32.totalorder %s706_s0, %s706_s0 }
  0x2f   :  { %p713_p8 = por %p712_p7, %p711_p6 }
  0x31   :  { %p714_p9 = pnand %p713_p8, %p707_p5 }
  0x33   :  { %717 = shalt.err (!%p714_p9)
}
  0x34   :  { %48 = dma.hbm_to_vmem [thread:$0]  %s912_s2, 512, %s43_s15, [#allocation6], %s772_s27, %s772_s27, %s773_s28  }
  0x35   :  { %s718_s5 = scalar_lea.hbm %s913_s3, 2048 }
  0x36   :  { %p719_p10 = scmp.ne.s32.totalorder %s913_s3, %s718_s5  ;;  %p722_p11 = scmp.lt.u32.totalorder %s718_s5, %s913_s3 }
  0x38   :  { %p724_p12 = pnand %p722_p11, %p719_p10 }
  0x3a   :  { %727 = shalt.err (!%p724_p12)
}
  0x3b   :  { %s728_s10 = scalar_lea.vmem %s842_s17, 2048  ;;  %p733_p0 = scmp.lt.s32.totalorder %s842_s17, %s842_s17 }
  0x3c   :  { %p729_p13 = scmp.ne.s32.totalorder %s842_s17, %s728_s10  ;;  %p734_p1 = scmp.lt.s32.totalorder %s728_s10, %s728_s10 }
  0x3e   :  { %p735_p2 = por %p734_p1, %p733_p0 }
  0x40   :  { %p736_p3 = pnand %p735_p2, %p729_p13 }
  0x42   :  { %739 = shalt.err (!%p736_p3)
}
  0x43   :  { %60 = dma.hbm_to_vmem [thread:$0]  %s913_s3, 2048, %s842_s17, [#allocation9], %s772_s27, %s772_s27, %s773_s28  }
  0x44   :  { %762 = dma.done.wait [#allocation3], 256  }
  0x45   :  { %763 = vsyncadd [#allocation3], 4294967040 }
  0x46   :  { %764 = dma.done.wait [#allocation6], 2560  }
  0x47   :  { %765 = vsyncadd [#allocation6], 4294964736 }
  0x48   :  { %766 = dma.done.wait [#allocation9], 2048  }
  0x49   :  { %767 = vsyncadd [#allocation9], 4294965248  ;;  %v776_v0 = vmov 0.0|0.0   ;;  %vm777_vm0 = vmmov 0   ;;  %v778_v1 = vmov 0.0   ;;  %v82_v2 = vld [vmem:[#allocation5] sm:$0xff]  ;;  %v188_v36 = vlaneseq }
  0x4a   :  { %570 = vmatprep.subr.bf16.mxu0 %v776_v0  ;;  %515 = vmatprep.mubr.msk.f32.mxu0 %vm777_vm0, %v778_v1  ;;  %v83_v3 = vld [vmem:[#allocation5 + $0x8] sm:$0xff]  ;;  %v84_v4 = vld [vmem:[#allocation5 + $0x10] sm:$0xff]  ;;  %v85_v6 = vld [vmem:[#allocation5 + $0x18] sm:$0xff]  ;;  %vm196_vm1 = vcmask 261120   ;;  %s779_s3 = smov [#allocation10]  }
  0x4b   :  { %v571_v5 = vpack.c.bf16 %v83_v3, %v82_v2  ;;  %v574_v7 = vpack.c.bf16 %v85_v6, %v84_v4  ;;  %v86_v8 = vld [vmem:[#allocation5 + $0x20] sm:$0xff]  ;;  %v87_v9 = vld [vmem:[#allocation5 + $0x28] sm:$0xff]  ;;  %v73_v10 = vld [vmem:[#allocation2] sm:$0xff]  ;;  %v189_v37 = vshrl.u32 %v188_v36, 7  ;;  %s420_s12 = sshll.u32 %s779_s3, 4  ;;  %s421_s12 = int_to_ptr.vmem [resolvable:$true] %s420_s12 }
  0x4c   :  { %v74_v11 = vld [vmem:[#allocation2 + $0x8] sm:$0xff]  ;;  %v577_v13 = vpack.c.bf16 %v87_v9, %v86_v8  ;;  %v88_v14 = vld [vmem:[#allocation5 + $0x30] sm:$0xff]  ;;  %v90_v18 = vld [vmem:[#allocation5 + $0x40] sm:$0xff]  ;;  %s740_s1 = scalar_lea.vmem %s421_s12, 256  ;;  %p745_p5 = scmp.lt.s32.totalorder %s421_s12, %s421_s12 }
  0x4d   :  { %572 = vmatpush3.bf16.msra.mxu0 %v571_v5  ;;  %v75_v12 = vadd.f32 %v74_v11, %v73_v10  ;;  %v89_v15 = vld [vmem:[#allocation5 + $0x38] sm:$0xff]  ;;  %v91_v19 = vld [vmem:[#allocation5 + $0x48] sm:$0xff]  ;;  %v92_v22 = vld [vmem:[#allocation5 + $0x50] sm:$0xff]  ;;  %v190_v38 = vsub.s32 0, %v189_v37  ;;  %p741_p4 = scmp.ne.s32.totalorder %s421_s12, %s740_s1  ;;  %p746_p6 = scmp.lt.s32.totalorder %s740_s1, %s740_s1 }
  0x4e   :  { %573 = vmatprep.subr.bf16.mxu0 %v776_v0  ;;  %v580_v17 = vpack.c.bf16 %v89_v15, %v88_v14  ;;  %v583_v21 = vpack.c.bf16 %v91_v19, %v90_v18  ;;  %v93_v23 = vld [vmem:[#allocation5 + $0x58] sm:$0xff]  ;;  %v94_v26 = vld [vmem:[#allocation5 + $0x60] sm:$0xff]  ;;  %v95_v27 = vld [vmem:[#allocation5 + $0x68] sm:$0xff] }
  0x4f   :  { %v76_v16 = vrot.slane %v75_v12, 4  ;;  %v586_v25 = vpack.c.bf16 %v93_v23, %v92_v22  ;;  %v589_v29 = vpack.c.bf16 %v95_v27, %v94_v26  ;;  %v96_v30 = vld [vmem:[#allocation5 + $0x70] sm:$0xff]  ;;  %v97_v31 = vld [vmem:[#allocation5 + $0x78] sm:$0xff]  ;;  %v168_v35 = vld [vmem:[#allocation7] sm:$0xff]  ;;  %p747_p7 = por %p746_p6, %p745_p5 }
  0x50   :  { %v592_v33 = vpack.c.bf16 %v97_v31, %v96_v30  ;;  %526 = vmatprep.mubr.msk.f32.mxu1 %vm196_vm1, %v168_v35  ;;  %v172_v47 = vld [vmem:[#allocation8] sm:$0xff]  ;;  %v173_v48 = vld [vmem:[#allocation8 + $0x8] sm:$0xff]  ;;  %v174_v51 = vld [vmem:[#allocation8 + $0x10] sm:$0xff] }
  0x51   :  { %575 = vmatpush3.bf16.msra.mxu0 %v574_v7  ;;  %v77_v20 = vadd.f32 %v76_v16, %v75_v12  ;;  %v602_v50 = vpack.c.bf16 %v173_v48, %v172_v47  ;;  %v175_v52 = vld [vmem:[#allocation8 + $0x18] sm:$0xff]  ;;  %v169_v53 = vld [vmem:[#allocation7 + $0x8] sm:$0xff]  ;;  %v170_v54 = vld [vmem:[#allocation7 + $0x10] sm:$0xff]  ;;  %p748_p8 = pnand %p747_p7, %p741_p4 }
  0x52   :  { %576 = vmatprep.subr.bf16.mxu0 %v776_v0  ;;  %v606_v55 = vpack.c.bf16 %v175_v52, %v174_v51  ;;  %v176_v56 = vld [vmem:[#allocation8 + $0x20] sm:$0xff]  ;;  %v177_v57 = vld [vmem:[#allocation8 + $0x28] sm:$0xff]  ;;  %v171_v58 = vld [vmem:[#allocation7 + $0x18] sm:$0xff] }
  0x53   :  { %v78_v24 = vrot.slane %v77_v20, 2  ;;  %v610_v59 = vpack.c.bf16 %v177_v57, %v176_v56  ;;  %v178_v60 = vld [vmem:[#allocation8 + $0x30] sm:$0xff]  ;;  %v179_v61 = vld [vmem:[#allocation8 + $0x38] sm:$0xff]  ;;  %v180_v63 = vld [vmem:[#allocation8 + $0x40] sm:$0xff] }
  0x54   :  { %v614_v62 = vpack.c.bf16 %v179_v61, %v178_v60  ;;  %v182_v2 = vld [vmem:[#allocation8 + $0x50] sm:$0xff]  ;;  %v183_v3 = vld [vmem:[#allocation8 + $0x58] sm:$0xff]  ;;  %v184_v5 = vld [vmem:[#allocation8 + $0x60] sm:$0xff] }
  0x55   :  { %578 = vmatpush3.bf16.msra.mxu0 %v577_v13  ;;  %v79_v28 = vadd.f32 %v78_v24, %v77_v20  ;;  %v622_v4 = vpack.c.bf16 %v183_v3, %v182_v2  ;;  %v185_v6 = vld [vmem:[#allocation8 + $0x68] sm:$0xff]  ;;  %v186_v8 = vld [vmem:[#allocation8 + $0x70] sm:$0xff]  ;;  %v187_v9 = vld [vmem:[#allocation8 + $0x78] sm:$0xff] }
  0x56   :  { %579 = vmatprep.subr.bf16.mxu0 %v776_v0  ;;  %v626_v7 = vpack.c.bf16 %v185_v6, %v184_v5 }
  0x57   :  { %v80_v32 = vrot.slane %v79_v28, 1 }
  0x59   :  { %581 = vmatpush3.bf16.msra.mxu0 %v580_v17  ;;  %v81_v34 = vadd.f32 %v80_v32, %v79_v28 }
  0x5a   :  { %582 = vmatprep.subr.bf16.mxu0 %v776_v0 }
  0x5d   :  { %584 = vmatpush3.bf16.msra.mxu0 %v583_v21 }
  0x5e   :  { %585 = vmatprep.subr.bf16.mxu0 %v776_v0 }
  0x61   :  { %587 = vmatpush3.bf16.msra.mxu0 %v586_v25 }
  0x62   :  { %588 = vmatprep.subr.bf16.mxu0 %v776_v0 }
  0x65   :  { %590 = vmatpush3.bf16.msra.mxu0 %v589_v29 }
  0x66   :  { %591 = vmatprep.subr.bf16.mxu0 %v776_v0  ;;  %v181_v0 = vld [vmem:[#allocation8 + $0x48] sm:$0xff] }
  0x67   :  { %v618_v1 = vpack.c.bf16 %v181_v0, %v180_v63 }
  0x69   :  { %593 = vmatpush3.bf16.msra.mxu0 %v592_v33 }
  0x6c   :  { %516 = vmatmul.mubr.f32.vlgmr.msra.gmra.mrb[0].mxu0 %v81_v34 }
 0x13f   :  { %v164_v39 = vpop.f32.mrb[0].mxu0 }
 0x140   :  { %v191_v40 = vrot.slane %v164_v39, %v190_v38  ;;  %v517_v41 = vpop.f32.mrb[1].mxu0 }
 0x142   :  { %v880_v42 = vsub.f32 %v73_v10, %v191_v40  ;;  %v882_v43 = vsub.f32 %v74_v11, %v191_v40  ;;  %v630_v10 = vpack.c.bf16 %v187_v9, %v186_v8 }
 0x144   :  { %v594_v44 = vpack.c.bf16 %v882_v43, %v880_v42  ;;  %v194_v45 = vmul.f32 %v880_v42, %v880_v42  ;;  %v195_v46 = vmul.f32 %v882_v43, %v882_v43 }
 0x146   :  { %595 = vmatprep.subr.bf16.mxu1 %v594_v44  ;;  %v598_v49 = vpack.c.bf16 %v195_v46, %v194_v45 }
 0x147   :  { %597 = vmatpush3.bf16.msra.mxu1 %v594_v44 }
 0x148   :  { %599 = vmatprep.subr.bf16.mxu1 %v598_v49 }
 0x14b   :  { %601 = vmatpush3.bf16.msra.mxu1 %v598_v49 }
 0x14c   :  { %603 = vmatprep.subr.bf16.mxu1 %v602_v50 }
 0x14e   :  { %527 = vmatmul.mubr.msk.f32.vlgmr.msra.gmra.mrb[0].mxu1 %vm196_vm1, %v169_v53 }
 0x14f   :  { %529 = vmatprep.mubr.msk.f32.mxu1 %vm196_vm1, %v170_v54  ;;  %605 = vmatpush3.bf16.msra.mxu1 %v602_v50 }
 0x150   :  { %607 = vmatprep.subr.bf16.mxu1 %v606_v55 }
 0x152   :  { %530 = vmatmul.mubr.msk.f32.gmra.mrb[2].mxu1 %vm196_vm1, %v171_v58 }
 0x153   :  { %609 = vmatpush3.bf16.msra.mxu1 %v606_v55 }
 0x154   :  { %611 = vmatprep.subr.bf16.mxu1 %v610_v59 }
 0x157   :  { %613 = vmatpush3.bf16.msra.mxu1 %v610_v59 }
 0x158   :  { %615 = vmatprep.subr.bf16.mxu1 %v614_v62 }
 0x15b   :  { %617 = vmatpush3.bf16.msra.mxu1 %v614_v62 }
 0x15c   :  { %619 = vmatprep.subr.bf16.mxu1 %v618_v1 }
 0x15f   :  { %621 = vmatpush3.bf16.msra.mxu1 %v618_v1 }
 0x160   :  { %623 = vmatprep.subr.bf16.mxu1 %v622_v4 }
 0x163   :  { %625 = vmatpush3.bf16.msra.mxu1 %v622_v4 }
 0x164   :  { %627 = vmatprep.subr.bf16.mxu1 %v626_v7 }
 0x167   :  { %629 = vmatpush3.bf16.msra.mxu1 %v626_v7 }
 0x168   :  { %631 = vmatprep.subr.bf16.mxu1 %v630_v10 }
 0x16b   :  { %633 = vmatpush3.bf16.msra.mxu1 %v630_v10 }
 0x221   :  { %v528_v11 = vpop.f32.mrb[0].mxu1 }
 0x222   :  { %v275_v12 = vpop.f32.mrb[1].mxu1 }
 0x223   :  { %564 = vmatprep.mubr.f32.mxu1 %v275_v12 }
 0x224   :  { %565 = vmatmul.mubr.f32.vlgmr.msra.gmra.mrb[4].mxu1 %v528_v11 }
 0x225   :  { %v531_v13 = vpop.f32.mrb[2].mxu1 }
 0x226   :  { %v285_v14 = vpop.f32.mrb[3].mxu1 }
 0x227   :  { %567 = vmatprep.mubr.f32.mxu1 %v285_v14 }
 0x228   :  { %568 = vmatmul.mubr.f32.gmra.mrb[6].mxu1 %v531_v13 }
 0x2f7   :  { %v566_v15 = vpop.f32.mrb[4].mxu1 }
 0x2f8   :  { %v360_v16 = vpop.f32.mrb[5].mxu1  ;;  %v380_v17 = vmul.f32 %v566_v15, %v566_v15  ;;  %v410_v45 = vsub.f32 %v882_v43, %v566_v15 }
 0x2f9   :  { %v379_v18 = vmul.f32 %v360_v16, %v360_v16  ;;  %v409_v47 = vsub.f32 %v880_v42, %v360_v16 }
 0x2fb   :  { %v569_v19 = vpop.f32.mrb[6].mxu1 }
 0x2fc   :  { %v382_v20 = vsub.f32 %v569_v19, %v380_v17  ;;  %v370_v21 = vpop.f32.mrb[7].mxu1 }
 0x2fd   :  { %v381_v22 = vsub.f32 %v370_v21, %v379_v18 }
 0x2fe   :  { %v384_v23 = vmax.f32 %v382_v20, 0.0 }
 0x2ff   :  { %v383_v24 = vmax.f32 %v381_v22, 0.0 }
 0x300   :  { %644 = vrsqrt.f32 %v384_v23  ;;  %vm394_vm2 = vcmp.eq.f32.partialorder %v384_v23, inf  ;;  %v397_v29 = vand.u32 2147483648, %v384_v23  ;;  %vm396_vm4 = vcmp.eq.f32.partialorder %v384_v23, 0.0 }
 0x301   :  { %646 = vrsqrt.f32 %v383_v24  ;;  %vm387_vm3 = vcmp.eq.f32.partialorder %v383_v24, inf  ;;  %v390_v30 = vand.u32 2147483648, %v383_v24  ;;  %vm389_vm5 = vcmp.eq.f32.partialorder %v383_v24, 0.0 }
 0x30a   :  { %v645_v25 = vpop.eup %644 }
 0x30b   :  { %v647_v26 = vpop.eup %646  ;;  %v393_v27 = vmul.f32 %v645_v25, %v384_v23 }
 0x30c   :  { %v386_v28 = vmul.f32 %v647_v26, %v383_v24 }
 0x30d   :  { %v395_v31 = vsel %vm394_vm2, %v384_v23, %v393_v27 }
 0x30e   :  { %v388_v32 = vsel %vm387_vm3, %v383_v24, %v386_v28  ;;  %v398_v33 = vsel %vm396_vm4, %v397_v29, %v395_v31 }
 0x30f   :  { %v391_v34 = vsel %vm389_vm5, %v390_v30, %v388_v32  ;;  %v400_v35 = vadd.f32 1e-08, %v398_v33 }
 0x310   :  { %v399_v36 = vadd.f32 1e-08, %v391_v34 }
 0x311   :  { %648 = vrcp.f32 %v400_v35 }
 0x312   :  { %650 = vrcp.f32 %v399_v36 }
 0x31b   :  { %v649_v37 = vpop.eup %648 }
 0x31c   :  { %v651_v38 = vpop.eup %650  ;;  %v404_v39 = vmul.f32 %v649_v37, %v400_v35 }
 0x31d   :  { %v403_v40 = vmul.f32 %v651_v38, %v399_v36 }
 0x31e   :  { %v406_v41 = vsub.f32 2.0, %v404_v39 }
 0x31f   :  { %v405_v44 = vsub.f32 2.0, %v403_v40 }
 0x320   :  { %v408_v46 = vmul.f32 %v649_v37, %v406_v41 }
 0x321   :  { %v407_v48 = vmul.f32 %v651_v38, %v405_v44 }
 0x322   :  { %v412_v49 = vmul.f32 %v410_v45, %v408_v46 }
 0x323   :  { %v411_v50 = vmul.f32 %v409_v47, %v407_v48 }
 0x324   :  { %414 = vst [vmem:[#allocation10 + $0x8] sm:$0xff] %v412_v49 }
 0x325   :  { %413 = vst [vmem:[#allocation10] sm:$0xff] %v411_v50 }
 0x326   :  { %751 = shalt.err (!%p748_p8)
}
 0x327   :  { %s752_s15 = scalar_lea.hbm %s914_s4, 256 }
 0x328   :  { %p753_p9 = scmp.ne.s32.totalorder %s914_s4, %s752_s15  ;;  %p756_p10 = scmp.lt.u32.totalorder %s752_s15, %s914_s4 }
 0x32a   :  { %p758_p11 = pnand %p756_p10, %p753_p9 }
 0x32c   :  { %761 = shalt.err (!%p758_p11)
}
 0x32d   :  { %426 = dma.vmem_to_hbm [thread:$0]  %s421_s12, 256, %s914_s4, [#allocation4], %s772_s27, %s772_s27, %s773_s28  }
 0x32e   :  { %768 = dma.done.wait [#allocation4], 256  }
 0x32f   :  { %769 = vsyncadd [#allocation4], 4294967040 }
 0x330   :  { %430 = vsyncpa [#allocation3], 1 }
 0x331   :  { %431 = vsyncpa [#allocation6], 1 }
 0x332   :  { %432 = vsyncpa [#allocation9], 1 }
 0x333   :  { %433 = vsyncpa [#allocation4], 1 }

</bundles_post_ra>
